<compile_context>
chip_gen: v5e
topology: v5e:2x2
jax: 0.10.0
libtpu: 0.0.40
codegen_flags: <defaults>
</compile_context>

<pallas_src>
import functools

import jax
import jax.numpy as jnp
import numpy as np
from jax import lax
from jax.experimental import pallas as pl
from jax.experimental.pallas import tpu as pltpu


def _round_up(x, m):
    return ((x + m - 1) // m) * m


def _vmem_limit_bytes():
    """~75% of physical VMEM (96 MiB v5e/v6e, 48 MiB v7x); v7x-safe fallback."""
    cap = None
    try:
        cap = getattr(pltpu.get_tpu_info(), "vmem_capacity_bytes", None)
    except Exception:
        cap = None
    if not cap:
        cap = 64 * 1024 * 1024
    return int(cap) * 3 // 4


def _pick_tiles(n):
    """(kernel-1 row tile, kernel-2 row tile, kernel-2 col tile, padded N).
    Padded N is divisible by all tiles; 'parallel' row axes get >=2 grid steps
    whenever N allows (v7x megacore)."""
    if n >= 1024:
        tr, ti, tj = 512, 256, 512
    elif n >= 256:
        tr, ti, tj = 256, 128, 256
    else:
        n8 = _round_up(max(n, 8), 8)
        ti = max(8, _round_up(n8 // 2, 8)) if n8 >= 16 else 8
        tr = tj = 2 * ti
    return tr, ti, tj, _round_up(n, tj)


def _pad2(a, rows, cols, dtype):
    """Zero-pad/cast a 2-D array; no-op pass over HBM when already aligned."""
    if a.shape == (rows, cols):
        return a if a.dtype == dtype else a.astype(dtype)
    out = jnp.zeros((rows, cols), dtype)
    return out.at[: a.shape[0], : a.shape[1]].set(a.astype(dtype))


# ----------------------------------------------------------------------------
# Kernel 1: fused 2-layer MLP + L2 row-normalization epilogue
#   h   = relu(x @ W1 + b1);  emb = h @ W2 + b2;  xn = emb / max(||emb||, eps)
# Weights pre-transposed to (in, out), bf16 MXU inputs, f32 accumulation.
# ----------------------------------------------------------------------------
def _mlp_norm_kernel(x_ref, w1_ref, b1_ref, w2_ref, b2_ref, emb_ref, xn_ref):
    h = jnp.dot(x_ref[...], w1_ref[...], preferred_element_type=jnp.float32)
    h = jnp.maximum(h + b1_ref[...], 0.0)                       # bias + ReLU (VPU)
    out = jnp.dot(h.astype(jnp.bfloat16), w2_ref[...],
                  preferred_element_type=jnp.float32)
    out = out + b2_ref[...]
    emb_ref[...] = out.astype(emb_ref.dtype)
    # F.normalize(p=2, dim=1, eps=1e-12): x * rsqrt(max(||x||^2, 1e-24)) (EUP)
    ss = jnp.sum(out * out, axis=1, keepdims=True)
    inv = lax.rsqrt(jnp.maximum(ss, 1e-24))
    xn_ref[...] = (out * inv).astype(xn_ref.dtype)


def _resident_spec(block_shape, nbytes):
    """Constant-index (resident) weight block. Large weights request
    single-buffering: a second buffer of a never-re-DMA'd block only wastes
    VMEM (critical for v7x's 64 MiB)."""
    index_map = lambda i: (0, 0)
    if nbytes >= (4 << 20):
        try:
            return pl.BlockSpec(block_shape, index_map, pipeline_mode=pl.Buffered(1))
        except Exception:
            pass
    return pl.BlockSpec(block_shape, index_map)


def _k1_vmem_estimate(tr, d_p, h1_p, h2_p):
    x_bufs = 2 * tr * d_p * 2                     # double-buffered bf16 input
    w_bufs = d_p * h1_p * 2 + h1_p * h2_p * 2     # single-buffered bf16 weights
    b_bufs = 2 * (h1_p + h2_p) * 4
    out_bufs = 2 * tr * h2_p * (4 + 2)            # f32 emb + bf16 xn, double-buffered
    live = tr * (h1_p + 2 * h2_p) * 4             # in-flight f32 temporaries
    return x_bufs + w_bufs + b_bufs + out_bufs + live


def mlp_embed_normalize(x, w1, b1, w2, b2, *, tile_rows, n_pad, vmem_limit):
    """Returns (embeddings (N, h2) f32, L2-normalized padded (n_pad, h2_p) bf16)."""
    n, d = x.shape
    h1, h2 = w1.shape[1], w2.shape[1]
    d_p, h1_p, h2_p = _round_up(d, 128), _round_up(h1, 128), _round_up(h2, 128)

    # Shrink the row tile if resident weights + double-buffered x would not fit.
    tr = tile_rows
    while (_k1_vmem_estimate(tr, d_p, h1_p, h2_p) > vmem_limit * 4 // 5
           and tr > 64 and tr % 2 == 0 and n_pad % (tr // 2) == 0):
        tr //= 2

    x_p = _pad2(x, n_pad, d_p, jnp.bfloat16)
    w1_p = _pad2(w1, d_p, h1_p, jnp.bfloat16)
    w2_p = _pad2(w2, h1_p, h2_p, jnp.bfloat16)
    b1_p = _pad2(b1, 1, h1_p, jnp.float32)
    b2_p = _pad2(b2, 1, h2_p, jnp.float32)

    emb_p, xn_p = pl.pallas_call(
        _mlp_norm_kernel,
        out_shape=(jax.ShapeDtypeStruct((n_pad, h2_p), jnp.float32),
                   jax.ShapeDtypeStruct((n_pad, h2_p), jnp.bfloat16)),
        grid=(n_pad // tr,),
        in_specs=[
            pl.BlockSpec((tr, d_p), lambda i: (i, 0)),
            _resident_spec((d_p, h1_p), d_p * h1_p * 2),
            pl.BlockSpec((1, h1_p), lambda i: (0, 0)),
            _resident_spec((h1_p, h2_p), h1_p * h2_p * 2),
            pl.BlockSpec((1, h2_p), lambda i: (0, 0)),
        ],
        out_specs=[
            pl.BlockSpec((tr, h2_p), lambda i: (i, 0)),
            pl.BlockSpec((tr, h2_p), lambda i: (i, 0)),
        ],
        compiler_params=pltpu.CompilerParams(
            dimension_semantics=("parallel",),
            vmem_limit_bytes=vmem_limit),
    )(x_p, w1_p, b1_p, w2_p, b2_p)

    return emb_p[:n, :h2], xn_p


# ----------------------------------------------------------------------------
# Kernel 2: fused cosine-similarity + streaming per-row top-(k+1)
# Grid = (row tiles [parallel], column tiles [arbitrary, last]).
# Running top-(k+1) per row tile lives in the last 128 lanes of VMEM scratch;
# each j block is merged via k+1 argmax-and-mask passes. S is never stored.
# ----------------------------------------------------------------------------
def _sim_topk_kernel(xa_ref, xb_ref, topv_ref, topi_ref, cv_ref, ci_ref,
                     *, n_valid, topk, tile_j):
    ti = xa_ref.shape[0]
    tj = tile_j
    j = pl.program_id(1)

    @pl.when(j == 0)
    def _init():                                   # reset running top-k tail
        cv_ref[:, tj:] = jnp.full((ti, 128), -jnp.inf, jnp.float32)
        ci_ref[:, tj:] = jnp.zeros((ti, 128), jnp.float32)

    # Similarity block: contract dim 1 of both operands -> MXU, no transpose.
    s = lax.dot_general(xa_ref[...], xb_ref[...],
                        dimension_numbers=(((1,), (1,)), ((), ())),
                        preferred_element_type=jnp.float32)      # (ti, tj)
    col = lax.broadcasted_iota(jnp.int32, (ti, tj), 1) + j * tj
    s = jnp.where(col < n_valid, s, -jnp.inf)                    # mask padded cols

    # Combined candidate buffer: [ this block | running top-k (tail, 128 lanes) ].
    cv_ref[:, :tj] = s
    ci_ref[:, :tj] = col.astype(jnp.float32)

    v = cv_ref[...]
    idx = ci_ref[...]
    pos = lax.broadcasted_iota(jnp.int32, v.shape, 1).astype(jnp.float32)

    vals_cols, inds_cols = [], []
    for t in range(topk):                          # k+1 argmax-and-mask passes
        m = jnp.max(v, axis=-1, keepdims=True)
        hit = v == m
        selpos = jnp.min(jnp.where(hit, pos, 1e9), axis=-1, keepdims=True)
        onehot = pos == selpos
        sel_idx = jnp.max(jnp.where(onehot, idx, -1.0), axis=-1, keepdims=True)
        vals_cols.append(m)
        inds_cols.append(sel_idx)
        v = jnp.where(onehot, -jnp.inf, v)

    for t in range(topk):                          # carry merged top-k to next j
        cv_ref[:, tj + t:tj + t + 1] = vals_cols[t]
        ci_ref[:, tj + t:tj + t + 1] = inds_cols[t]

    @pl.when(j == pl.num_programs(1) - 1)
    def _emit():                                   # emit only (N, k+1) to HBM
        for t in range(topk):
            topv_ref[:, t:t + 1] = vals_cols[t]
            topi_ref[:, t:t + 1] = inds_cols[t].astype(jnp.int32)


def cosine_topk(xn_p, n_valid, k, *, tile_i, tile_j, vmem_limit):
    """xn_p: (N_pad, D_pad) L2-normalized bf16. Returns (vals, inds) (n_valid, k+1)."""
    n_p, d_p = xn_p.shape
    assert n_p % tile_i == 0 and n_p % tile_j == 0
    assert n_valid >= k + 1
    topk = k + 1
    kernel = functools.partial(_sim_topk_kernel, n_valid=n_valid, topk=topk,
                               tile_j=tile_j)
    vals, inds = pl.pallas_call(
        kernel,
        out_shape=(jax.ShapeDtypeStruct((n_p, topk), jnp.float32),
                   jax.ShapeDtypeStruct((n_p, topk), jnp.int32)),
        grid=(n_p // tile_i, n_p // tile_j),
        in_specs=[
            pl.BlockSpec((tile_i, d_p), lambda i, j: (i, 0)),
            pl.BlockSpec((tile_j, d_p), lambda i, j: (j, 0)),
        ],
        out_specs=[
            pl.BlockSpec((tile_i, topk), lambda i, j: (i, 0)),
            pl.BlockSpec((tile_i, topk), lambda i, j: (i, 0)),
        ],
        scratch_shapes=[
            pltpu.VMEM((tile_i, tile_j + 128), jnp.float32),   # candidate values
            pltpu.VMEM((tile_i, tile_j + 128), jnp.float32),   # candidate indices
        ],
        compiler_params=pltpu.CompilerParams(
            dimension_semantics=("parallel", "arbitrary"),
            vmem_limit_bytes=vmem_limit),
    )(xn_p, xn_p)
    return vals[:n_valid], inds[:n_valid]


# ----------------------------------------------------------------------------
# knn_fast glue (SUBLIME-style degree normalization)
# TODO(synk): the index_add_ (scatter-add) degree accumulation and edge-list
#             assembly have no clean Pallas equivalent; kept as plain JAX ops.
# ----------------------------------------------------------------------------
def knn_from_topk(vals, inds, n, k):
    kk = k + 1
    rows = jnp.repeat(jnp.arange(n, dtype=jnp.int32), kk)
    cols = inds.reshape(-1).astype(jnp.int32)
    values = vals.reshape(-1).astype(jnp.float32)
    norm_row = jnp.sum(vals, axis=1)
    norm_col = jnp.zeros((n,), jnp.float32).at[cols].add(values)
    norm = norm_row + norm_col
    values = values * (norm[rows] ** -0.5) * (norm[cols] ** -0.5)
    edge_index = jnp.stack([rows, cols], axis=0)
    return edge_index, values


# ----------------------------------------------------------------------------
# MLP_learner forward
# ----------------------------------------------------------------------------
def mlp_learner_forward(features, params, k):
    w1, b1, w2, b2 = params
    n = features.shape[0]
    tr, ti, tj, n_pad = _pick_tiles(n)
    vmem = _vmem_limit_bytes()
    embeddings, xn_pad = mlp_embed_normalize(features, w1, b1, w2, b2,
                                             tile_rows=tr, n_pad=n_pad,
                                             vmem_limit=vmem)
    vals, inds = cosine_topk(xn_pad, n, k, tile_i=ti, tile_j=tj, vmem_limit=vmem)
    edge_index, edge_weight = knn_from_topk(vals, inds, n, k)
    return edge_index, edge_weight, embeddings


def init_params(key, isize):
    # nlayers = 2 branch of MLP_learner.__init__:
    #   Linear(isize, isize//4), Linear(isize//4, isize//8)
    h1, h2 = isize // 4, isize // 8
    k1, k2, k3, k4 = jax.random.split(key, 4)
    lim1 = 1.0 / np.sqrt(isize)
    lim2 = 1.0 / np.sqrt(h1)
    w1 = jax.random.uniform(k1, (isize, h1), jnp.float32, -lim1, lim1)  # W1^T
    b1 = jax.random.uniform(k2, (1, h1), jnp.float32, -lim1, lim1)
    w2 = jax.random.uniform(k3, (h1, h2), jnp.float32, -lim2, lim2)     # W2^T
    b2 = jax.random.uniform(k4, (1, h2), jnp.float32, -lim2, lim2)
    return w1, b1, w2, b2


if __name__ == "__main__":
    key = jax.random.PRNGKey(0)
    k_feat, k_param = jax.random.split(key)

    N, isize, k = 32, 32, 4          # 32 nodes, feature dim 32, k-NN with k=4
    features = jax.random.normal(k_feat, (N, isize), dtype=jnp.float32)
    params = init_params(k_param, isize)
    w1, b1, w2, b2 = params

    edge_index, edge_weight, embeddings = mlp_learner_forward(features, params, k)
    jax.block_until_ready((edge_index, edge_weight, embeddings))

    # --- Reference mirroring the kernel's dtype policy (bf16 MXU, f32 accum) --
    xb = features.astype(jnp.bfloat16)
    w1b, w2b = w1.astype(jnp.bfloat16), w2.astype(jnp.bfloat16)
    h_ref = jnp.maximum(jnp.dot(xb, w1b, preferred_element_type=jnp.float32) + b1, 0.0)
    emb_ref = jnp.dot(h_ref.astype(jnp.bfloat16), w2b,
                      preferred_element_type=jnp.float32) + b2
    ss_ref = jnp.sum(emb_ref * emb_ref, axis=1, keepdims=True)
    xn_ref = (emb_ref * lax.rsqrt(jnp.maximum(ss_ref, 1e-24))).astype(jnp.bfloat16)
    sim_ref = jnp.dot(xn_ref, xn_ref.T, preferred_element_type=jnp.float32)
    ref_vals, _ = lax.top_k(sim_ref, k + 1)

    # --- Validate the fused streaming top-(k+1) against a materialized ref ---
    tr, ti, tj, n_pad = _pick_tiles(N)
    vmem = _vmem_limit_bytes()
    _, xn_pad = mlp_embed_normalize(features, w1, b1, w2, b2,
                                    tile_rows=tr, n_pad=n_pad, vmem_limit=vmem)
    vals, inds = cosine_topk(xn_pad, N, k, tile_i=ti, tile_j=tj, vmem_limit=vmem)
    jax.block_until_ready((vals, inds))

    vals_np, inds_np, sim_np = np.asarray(vals), np.asarray(inds), np.asarray(sim_ref)

    assert np.allclose(np.asarray(embeddings), np.asarray(emb_ref), atol=1e-3)
    emb_f32 = jnp.maximum(features @ w1 + b1, 0.0) @ w2 + b2
    assert np.allclose(np.asarray(embeddings), np.asarray(emb_f32), atol=5e-2)

    # streaming top-(k+1) values match lax.top_k on the materialized matrix
    assert np.allclose(vals_np, np.asarray(ref_vals), atol=2e-2)
    # returned indices are in-range, distinct per row, and point at matching sims
    assert inds_np.min() >= 0 and inds_np.max() < N
    rows_np = np.repeat(np.arange(N), k + 1)
    assert np.allclose(sim_np[rows_np, inds_np.reshape(-1)],
                       vals_np.reshape(-1), atol=2e-2)
    assert all(len(set(r.tolist())) == k + 1 for r in inds_np)

    assert edge_index.shape == (2, N * (k + 1))
    assert edge_weight.shape == (N * (k + 1),)
    assert embeddings.shape == (N, isize // 8)
    assert bool(jnp.all(jnp.isfinite(edge_weight)))

    print("KERNEL_OK")
</pallas_src>

<mosaic_0001>
module attributes {stable_mosaic.version = 11 : i64} {
  func.func @_mlp_norm_kernel(%arg0: i32, %arg1: memref<32x128xbf16, #tpu.memory_space<vmem>>, %arg2: memref<128x128xbf16, #tpu.memory_space<vmem>>, %arg3: memref<1x128xf32, #tpu.memory_space<vmem>>, %arg4: memref<128x128xbf16, #tpu.memory_space<vmem>>, %arg5: memref<1x128xf32, #tpu.memory_space<vmem>>, %arg6: memref<32x128xf32, #tpu.memory_space<vmem>>, %arg7: memref<32x128xbf16, #tpu.memory_space<vmem>>) attributes {dimension_semantics = [#tpu.dimension_semantics<parallel>], iteration_bounds = array<i64: 1>, scalar_prefetch = 0 : i64, scratch_operands = 0 : i64, tpu.core_type = #tpu.core_type<tc>, window_params = [{transform_indices = @transform_0, window_bounds = array<i64: 32, 128>}, {pipeline_mode = #tpu.pipeline_mode<synchronous>, transform_indices = @transform_1, window_bounds = array<i64: 128, 128>}, {pipeline_mode = #tpu.pipeline_mode<synchronous>, transform_indices = @transform_2, window_bounds = array<i64: 1, 128>}, {pipeline_mode = #tpu.pipeline_mode<synchronous>, transform_indices = @transform_3, window_bounds = array<i64: 128, 128>}, {pipeline_mode = #tpu.pipeline_mode<synchronous>, transform_indices = @transform_4, window_bounds = array<i64: 1, 128>}, {transform_indices = @transform_5, window_bounds = array<i64: 32, 128>}, {transform_indices = @transform_6, window_bounds = array<i64: 32, 128>}]} {
    %c0 = arith.constant 0 : index
    %c0_0 = arith.constant 0 : index
    %0 = vector.load %arg1[%c0, %c0_0] : memref<32x128xbf16, #tpu.memory_space<vmem>>, vector<32x128xbf16>
    %c0_1 = arith.constant 0 : index
    %c0_2 = arith.constant 0 : index
    %1 = vector.load %arg2[%c0_1, %c0_2] : memref<128x128xbf16, #tpu.memory_space<vmem>>, vector<128x128xbf16>
    %cst = arith.constant dense<0.000000e+00> : vector<32x128xf32>
    %2 = tpu.matmul %0, %1, %cst {dimension_numbers = #tpu.dot_dimension_numbers<[1], [0], [0], [1], [0, 0, 1, 1], [], []>} : vector<32x128xbf16>, vector<128x128xbf16>, vector<32x128xf32> -> vector<32x128xf32>
    %c0_3 = arith.constant 0 : index
    %c0_4 = arith.constant 0 : index
    %3 = vector.load %arg3[%c0_3, %c0_4] : memref<1x128xf32, #tpu.memory_space<vmem>>, vector<1x128xf32>
    %4 = vector.broadcast %3 : vector<1x128xf32> to vector<32x128xf32>
    %5 = arith.addf %2, %4 : vector<32x128xf32>
    %cst_5 = arith.constant 0.000000e+00 : f32
    %6 = vector.broadcast %cst_5 : f32 to vector<32x128xf32>
    %7 = arith.maximumf %5, %6 : vector<32x128xf32>
    %8 = arith.truncf %7 : vector<32x128xf32> to vector<32x128xbf16>
    %c0_6 = arith.constant 0 : index
    %c0_7 = arith.constant 0 : index
    %9 = vector.load %arg4[%c0_6, %c0_7] : memref<128x128xbf16, #tpu.memory_space<vmem>>, vector<128x128xbf16>
    %cst_8 = arith.constant dense<0.000000e+00> : vector<32x128xf32>
    %10 = tpu.matmul %8, %9, %cst_8 {dimension_numbers = #tpu.dot_dimension_numbers<[1], [0], [0], [1], [0, 0, 1, 1], [], []>} : vector<32x128xbf16>, vector<128x128xbf16>, vector<32x128xf32> -> vector<32x128xf32>
    %c0_9 = arith.constant 0 : index
    %c0_10 = arith.constant 0 : index
    %11 = vector.load %arg5[%c0_9, %c0_10] : memref<1x128xf32, #tpu.memory_space<vmem>>, vector<1x128xf32>
    %12 = vector.broadcast %11 : vector<1x128xf32> to vector<32x128xf32>
    %13 = arith.addf %10, %12 : vector<32x128xf32>
    %c0_11 = arith.constant 0 : index
    %c0_12 = arith.constant 0 : index
    %14 = vector.load %arg6[%c0_11, %c0_12] : memref<32x128xf32, #tpu.memory_space<vmem>>, vector<32x128xf32>
    tpu.vector_store %arg6[%c0_11, %c0_12], %13 {strides = array<i32>} : memref<32x128xf32, #tpu.memory_space<vmem>>, vector<32x128xf32>,
    %15 = arith.mulf %13, %13 : vector<32x128xf32>
    %cst_13 = arith.constant dense<0.000000e+00> : vector<32xf32>
    %16 = vector.multi_reduction <add>, %15, %cst_13 [1] : vector<32x128xf32> to vector<32xf32>
    %17 = vector.shape_cast %16 : vector<32xf32> to vector<32x1xf32>
    %cst_14 = arith.constant 1.000000e-24 : f32
    %18 = vector.broadcast %cst_14 : f32 to vector<32x1xf32>
    %19 = arith.maximumf %17, %18 : vector<32x1xf32>
    %20 = math.rsqrt %19 : vector<32x1xf32>
    %21 = vector.broadcast %20 : vector<32x1xf32> to vector<32x128xf32>
    %22 = arith.mulf %13, %21 : vector<32x128xf32>
    %23 = arith.truncf %22 : vector<32x128xf32> to vector<32x128xbf16>
    %c0_15 = arith.constant 0 : index
    %c0_16 = arith.constant 0 : index
    %24 = vector.load %arg7[%c0_15, %c0_16] : memref<32x128xbf16, #tpu.memory_space<vmem>>, vector<32x128xbf16>
    tpu.vector_store %arg7[%c0_15, %c0_16], %23 {strides = array<i32>} : memref<32x128xbf16, #tpu.memory_space<vmem>>, vector<32x128xbf16>,
    return
  }
  func.func @transform_0(%arg0: i32) -> (i32, i32) {
    %c0_i32 = arith.constant 0 : i32
    %c0_i32_0 = arith.constant 0 : i32
    return %arg0, %c0_i32 : i32, i32
  }
  func.func @transform_1(%arg0: i32) -> (i32, i32) {
    %c0_i32 = arith.constant 0 : i32
    %c0_i32_0 = arith.constant 0 : i32
    %c0_i32_1 = arith.constant 0 : i32
    return %c0_i32, %c0_i32_0 : i32, i32
  }
  func.func @transform_2(%arg0: i32) -> (i32, i32) {
    %c0_i32 = arith.constant 0 : i32
    %c0_i32_0 = arith.constant 0 : i32
    %c0_i32_1 = arith.constant 0 : i32
    return %c0_i32, %c0_i32_0 : i32, i32
  }
  func.func @transform_3(%arg0: i32) -> (i32, i32) {
    %c0_i32 = arith.constant 0 : i32
    %c0_i32_0 = arith.constant 0 : i32
    %c0_i32_1 = arith.constant 0 : i32
    return %c0_i32, %c0_i32_0 : i32, i32
  }
  func.func @transform_4(%arg0: i32) -> (i32, i32) {
    %c0_i32 = arith.constant 0 : i32
    %c0_i32_0 = arith.constant 0 : i32
    %c0_i32_1 = arith.constant 0 : i32
    return %c0_i32, %c0_i32_0 : i32, i32
  }
  func.func @transform_5(%arg0: i32) -> (i32, i32) {
    %c0_i32 = arith.constant 0 : i32
    %c0_i32_0 = arith.constant 0 : i32
    return %arg0, %c0_i32 : i32, i32
  }
  func.func @transform_6(%arg0: i32) -> (i32, i32) {
    %c0_i32 = arith.constant 0 : i32
    %c0_i32_0 = arith.constant 0 : i32
    return %arg0, %c0_i32 : i32, i32
  }
}

</mosaic_0001>

<bundles_post_ra>
// kernel: tpu_custom_call.1
= control target key start
LH: loop header
LB: loop body
LE: loop exit
PB: predicated region body
PF: predicated region fallthrough
CT: control target
= control target key end

     0   :  { %12 = vsyncpa [#allocation3], 0  ;;  %s736_s0 = inlined_call_operand.hbm [shape: bf16[32,128], index: 0, kind: input, shape index: {}]   ;;  %s737_s1 = inlined_call_operand.hbm [shape: bf16[128,128], index: 1, kind: input, shape index: {}]   ;;  %s738_s2 = inlined_call_operand.vmem [shape: f32[1,128], index: 2, kind: input, shape index: {}]   ;;  %s739_s3 = inlined_call_operand.hbm [shape: bf16[128,128], index: 3, kind: input, shape index: {}]   ;;  %s740_s4 = inlined_call_operand.vmem [shape: f32[1,128], index: 4, kind: input, shape index: {}]   ;;  %s741_s5 = inlined_call_operand.hbm [shape: f32[32,128], index: 5, kind: output, shape index: {0}]   ;;  %s742_s6 = inlined_call_operand.hbm [shape: bf16[32,128], index: 6, kind: output, shape index: {1}]  }
   0x1   :  { %13 = vsyncpa [#allocation6], 0 }
   0x2   :  { %14 = vsyncpa [#allocation4], 0 }
   0x3   :  { %15 = vsyncpa [#allocation10], 0  ;;  %s33_s23 = sshll.u32 %s737_s1, 4  ;;  %s641_s24 = smov [#allocation5]   ;;  %s34_s23 = int_to_ptr.hbm [resolvable:$true] %s33_s23 }
   0x4   :  { %s35_s25 = sshll.u32 %s641_s24, 4  ;;  %s20_s28 = sshll.u32 %s736_s0, 4  ;;  %s36_s25 = int_to_ptr.vmem [resolvable:$true] %s35_s25  ;;  %s21_s28 = int_to_ptr.hbm [resolvable:$true] %s20_s28 }
   0x5   :  { %s642_s29 = smov 64   ;;  %s643_s30 = smov 4  }
   0x6   :  { %41 = dma.hbm_to_vmem [thread:$0]  %s34_s23, 1024, %s36_s25, [#allocation6], %s642_s29, %s642_s29, %s643_s30  }
   0x7   :  { %s644_s7 = smov [#allocation2]   ;;  %s48_s1 = sshll.u32 %s739_s3, 4  ;;  %s49_s1 = int_to_ptr.hbm [resolvable:$true] %s48_s1 }
   0x8   :  { %s22_s8 = sshll.u32 %s644_s7, 4  ;;  %s645_s0 = smov [#allocation7]   ;;  %s23_s8 = int_to_ptr.vmem [resolvable:$true] %s22_s8 }
   0x9   :  { %28 = dma.hbm_to_vmem [thread:$0]  %s21_s28, 256, %s23_s8, [#allocation3], %s642_s29, %s642_s29, %s643_s30  }
   0xa   :  { %s50_s11 = sshll.u32 %s645_s0, 4  ;;  %s51_s11 = int_to_ptr.vmem [resolvable:$true] %s50_s11 }
   0xb   :  { %56 = dma.hbm_to_vmem [thread:$0]  %s49_s1, 1024, %s51_s11, [#allocation6], %s642_s29, %s642_s29, %s643_s30  }
   0xc   :  { %633 = dma.done.wait [#allocation3], 256  }
   0xd   :  { %634 = vsyncadd [#allocation3], 4294967040 }
   0xe   :  { %635 = dma.done.wait [#allocation6], 2048  }
   0xf   :  { %636 = vsyncadd [#allocation6], 4294965248  ;;  %v458_v0 = vld [vmem:[#allocation5 + $0x38] sm:$0xff]  ;;  %v457_v1 = vld [vmem:[#allocation5 + $0x30] sm:$0xff]  ;;  %s345_s15 = sshll.u32 %s741_s5, 4  ;;  %s646_s16 = smov [#allocation8]   ;;  %s346_s15 = int_to_ptr.hbm [resolvable:$true] %s345_s15 }
  0x10   :  { %155 = vmatpush.bf16.msra.mxu0 %v458_v0  ;;  %478 = vmatpush.bf16.msra.mxu2 %v458_v0  ;;  %v466_v2 = vld [vmem:[#allocation7 + $0x38] sm:$0xff]  ;;  %v465_v3 = vld [vmem:[#allocation7 + $0x30] sm:$0xff]  ;;  %v456_v4 = vld [vmem:[#allocation5 + $0x28] sm:$0xff]  ;;  %s343_s17 = sshll.u32 %s646_s16, 4  ;;  %s647_s18 = smov 128   ;;  %s344_s17 = int_to_ptr.vmem [resolvable:$true] %s343_s17 }
  0x11   :  { %248 = vmatpush.bf16.msra.mxu1 %v466_v2  ;;  %486 = vmatpush.bf16.msra.mxu3 %v466_v2  ;;  %v464_v5 = vld [vmem:[#allocation7 + $0x28] sm:$0xff]  ;;  %v455_v6 = vld [vmem:[#allocation5 + $0x20] sm:$0xff]  ;;  %v454_v8 = vld [vmem:[#allocation5 + $0x18] sm:$0xff]  ;;  %s648_s19 = smov 8   ;;  %s649_s5 = smov [#allocation9]  }
  0x12   :  { %v463_v7 = vld [vmem:[#allocation7 + $0x20] sm:$0xff]  ;;  %v453_v9 = vld [vmem:[#allocation5 + $0x10] sm:$0xff]  ;;  %v452_v10 = vld [vmem:[#allocation5 + $0x8] sm:$0xff]  ;;  %s356_s20 = sshll.u32 %s649_s5, 4  ;;  %s358_s23 = sshll.u32 %s742_s6, 4  ;;  %s357_s20 = int_to_ptr.vmem [resolvable:$true] %s356_s20  ;;  %s359_s23 = int_to_ptr.hbm [resolvable:$true] %s358_s23 }
  0x13   :  { %v451_v11 = vld [vmem:[#allocation5] sm:$0xff]  ;;  %v449_v12 = vld [vmem:[#allocation2] sm:$0xff]  ;;  %v450_v13 = vld [vmem:[#allocation2 + $0x8] sm:$0xff] }
  0x14   :  { %156 = vmatpush.bf16.msra.mxu0 %v457_v1  ;;  %479 = vmatpush.bf16.msra.mxu2 %v457_v1  ;;  %v462_v14 = vld [vmem:[#allocation7 + $0x18] sm:$0xff]  ;;  %v461_v15 = vld [vmem:[#allocation7 + $0x10] sm:$0xff]  ;;  %v460_v16 = vld [vmem:[#allocation7 + $0x8] sm:$0xff] }
  0x15   :  { %249 = vmatpush.bf16.msra.mxu1 %v465_v3  ;;  %487 = vmatpush.bf16.msra.mxu3 %v465_v3  ;;  %v459_v17 = vld [vmem:[#allocation7] sm:$0xff]  ;;  %v503_v19 = vld [vmem:[%s738_s2] ss:$0 sm:$0xff] }
  0x16   :  { %v504_v33 = vld [vmem:[%s740_s4] ss:$0 sm:$0xff] }
  0x18   :  { %157 = vmatpush.bf16.msra.mxu0 %v456_v4  ;;  %480 = vmatpush.bf16.msra.mxu2 %v456_v4 }
  0x19   :  { %250 = vmatpush.bf16.msra.mxu1 %v464_v5  ;;  %488 = vmatpush.bf16.msra.mxu3 %v464_v5 }
  0x1c   :  { %158 = vmatpush.bf16.msra.mxu0 %v455_v6  ;;  %481 = vmatpush.bf16.msra.mxu2 %v455_v6 }
  0x1d   :  { %251 = vmatpush.bf16.msra.mxu1 %v463_v7  ;;  %489 = vmatpush.bf16.msra.mxu3 %v463_v7 }
  0x20   :  { %159 = vmatpush.bf16.msra.mxu0 %v454_v8  ;;  %482 = vmatpush.bf16.msra.mxu2 %v454_v8 }
  0x21   :  { %252 = vmatpush.bf16.msra.mxu1 %v462_v14  ;;  %490 = vmatpush.bf16.msra.mxu3 %v462_v14 }
  0x24   :  { %160 = vmatpush.bf16.msra.mxu0 %v453_v9  ;;  %483 = vmatpush.bf16.msra.mxu2 %v453_v9 }
  0x25   :  { %253 = vmatpush.bf16.msra.mxu1 %v461_v15  ;;  %491 = vmatpush.bf16.msra.mxu3 %v461_v15 }
  0x28   :  { %161 = vmatpush.bf16.msra.mxu0 %v452_v10  ;;  %484 = vmatpush.bf16.msra.mxu2 %v452_v10 }
  0x29   :  { %254 = vmatpush.bf16.msra.mxu1 %v460_v16  ;;  %492 = vmatpush.bf16.msra.mxu3 %v460_v16 }
  0x2c   :  { %162 = vmatpush.bf16.msra.mxu0 %v451_v11  ;;  %485 = vmatpush.bf16.msra.mxu2 %v451_v11 }
  0x2d   :  { %255 = vmatpush.bf16.msra.mxu1 %v459_v17  ;;  %493 = vmatpush.bf16.msra.mxu3 %v459_v17 }
  0x2f   :  { %163 = vmatmul.bf16.vlgmr.msra.gmra.mxu0 %v449_v12  ;;  %168 = vmatmul.bf16.vlgmr.msra.gmra.mxu2 %v450_v13 }
  0xac   :  { %v164_v18 = vpop.f32.mrf.mxu0 }
  0xad   :  { %v165_v20 = vadd.f32 %v503_v19, %v164_v18 }
  0xaf   :  { %v174_v23 = vmax.f32 %v165_v20, 0.0 }
  0xb2   :  { %v169_v21 = vpop.f32.mrf.mxu2 }
  0xb3   :  { %v170_v26 = vadd.f32 %v503_v19, %v169_v21 }
  0xb4   :  { %v166_v22 = vpop.f32.mrf.mxu0 }
  0xb5   :  { %v167_v24 = vadd.f32 %v503_v19, %v166_v22  ;;  %v176_v30 = vmax.f32 %v170_v26, 0.0 }
  0xb7   :  { %v175_v25 = vmax.f32 %v167_v24, 0.0 }
  0xb9   :  { %v178_v27 = vpack.c.bf16 %v175_v25, %v174_v23 }
  0xba   :  { %v171_v28 = vpop.f32.mrf.mxu2 }
  0xbb   :  { %v172_v29 = vadd.f32 %v503_v19, %v171_v28  ;;  %256 = vmatmul.bf16.vlgmr.msra.gmra.mxu1 %v178_v27 }
  0xbd   :  { %v177_v31 = vmax.f32 %v172_v29, 0.0 }
  0xbf   :  { %v179_v32 = vpack.c.bf16 %v177_v31, %v176_v30 }
  0xc1   :  { %261 = vmatmul.bf16.vlgmr.msra.gmra.mxu3 %v179_v32 }
 0x138   :  { %v257_v34 = vpop.f32.mrf.mxu1 }
 0x139   :  { %v709_v35 = vadd.f32 %v504_v33, %v257_v34 }
 0x13b   :  { %267 = vst [vmem:[#allocation8] sm:$0xff] %v709_v35  ;;  %v271_v36 = vmul.f32 %v709_v35, %v709_v35 }
 0x13d   :  { %275 = vadd.xlane.f32.xlu0 %v271_v36 }
 0x140   :  { %v259_v37 = vpop.f32.mrf.mxu1 }
 0x141   :  { %v260_v38 = vadd.f32 %v504_v33, %v259_v37 }
 0x143   :  { %268 = vst [vmem:[#allocation8 + $0x8] sm:$0xff] %v260_v38  ;;  %v272_v39 = vmul.f32 %v260_v38, %v260_v38 }
 0x144   :  { %v262_v40 = vpop.f32.mrf.mxu3 }
 0x145   :  { %v714_v41 = vadd.f32 %v504_v33, %v262_v40  ;;  %277 = vadd.xlane.f32.xlu0 %v272_v39 }
 0x147   :  { %269 = vst [vmem:[#allocation8 + $0x10] sm:$0xff] %v714_v41  ;;  %v273_v42 = vmul.f32 %v714_v41, %v714_v41 }
 0x149   :  { %279 = vadd.xlane.f32.xlu1 %v273_v42 }
 0x14c   :  { %v264_v43 = vpop.f32.mrf.mxu3 }
 0x14d   :  { %v719_v44 = vadd.f32 %v504_v33, %v264_v43 }
 0x14f   :  { %270 = vst [vmem:[#allocation8 + $0x18] sm:$0xff] %v719_v44  ;;  %v274_v45 = vmul.f32 %v719_v44, %v719_v44 }
 0x150   :  { %351 = dma.vmem_to_hbm [thread:$0]  %s344_s17, 512, %s346_s15, [#allocation4], %s647_s18, %s647_s18, %s648_s19  }
 0x151   :  { %281 = vadd.xlane.f32.xlu1 %v274_v45 }
 0x1b0   :  { %v276_v46 = vpop.xlane.xlu0 %275 }
 0x1b1   :  { %v283_v47 = vmax.f32 %v276_v46, 1e-24 }
 0x1b3   :  { %505 = vrsqrt.f32 %v283_v47  ;;  %vm293_vm1 = vweird.f32 %v283_v47 }
 0x1b8   :  { %v278_v48 = vpop.xlane.xlu0 %277 }
 0x1b9   :  { %v506_v49 = vpop.eup %505  ;;  %v284_v50 = vmax.f32 %v278_v48, 1e-24 }
 0x1ba   :  { %v288_v51 = vmul.f32 %v506_v49, %v283_v47  ;;  %vm294_vm0 = vweird.f32 %v506_v49 }
 0x1bb   :  { %507 = vrsqrt.f32 %v284_v50  ;;  %vm295_vm3 = vmor %vm293_vm1, %vm294_vm0  ;;  %vm303_vm4 = vweird.f32 %v284_v50 }
 0x1bc   :  { %v289_v52 = vmul.f32 %v506_v49, %v288_v51  ;;  %v280_v53 = vpop.xlane.xlu1 %279 }
 0x1bd   :  { %v285_v54 = vmax.f32 %v280_v53, 1e-24 }
 0x1be   :  { %v290_v55 = vmul.f32 0.5, %v289_v52 }
 0x1bf   :  { %509 = vrsqrt.f32 %v285_v54  ;;  %vm313_vm7 = vweird.f32 %v285_v54 }
 0x1c0   :  { %v291_v57 = vsub.f32 1.5, %v290_v55 }
 0x1c1   :  { %v508_v56 = vpop.eup %507 }
 0x1c2   :  { %v298_v58 = vmul.f32 %v508_v56, %v284_v50  ;;  %v292_v63 = vmul.f32 %v506_v49, %v291_v57  ;;  %vm304_vm2 = vweird.f32 %v508_v56 }
 0x1c3   :  { %vm305_vm5 = vmor %vm303_vm4, %vm304_vm2 }
 0x1c4   :  { %v299_v59 = vmul.f32 %v508_v56, %v298_v58  ;;  %v282_v60 = vpop.xlane.xlu1 %281  ;;  %v296_v4 = vsel %vm295_vm3, %v506_v49, %v292_v63 }
 0x1c5   :  { %v510_v61 = vpop.eup %509  ;;  %v286_v62 = vmax.f32 %v282_v60, 1e-24  ;;  %v327_v9 = vmul.f32 %v296_v4, %v709_v35 }
 0x1c6   :  { %v300_v0 = vmul.f32 0.5, %v299_v59  ;;  %v308_v1 = vmul.f32 %v510_v61, %v285_v54  ;;  %vm314_vm6 = vweird.f32 %v510_v61 }
 0x1c7   :  { %511 = vrsqrt.f32 %v286_v62  ;;  %vm315_vm9 = vmor %vm313_vm7, %vm314_vm6  ;;  %vm323_vm10 = vweird.f32 %v286_v62 }
 0x1c8   :  { %v301_v2 = vsub.f32 1.5, %v300_v0  ;;  %v309_v3 = vmul.f32 %v510_v61, %v308_v1 }
 0x1ca   :  { %v302_v5 = vmul.f32 %v508_v56, %v301_v2  ;;  %v310_v6 = vmul.f32 0.5, %v309_v3 }
 0x1cc   :  { %v306_v7 = vsel %vm305_vm5, %v508_v56, %v302_v5  ;;  %v311_v11 = vsub.f32 1.5, %v310_v6 }
 0x1cd   :  { %v512_v8 = vpop.eup %511  ;;  %v328_v10 = vmul.f32 %v306_v7, %v260_v38 }
 0x1ce   :  { %v318_v12 = vmul.f32 %v512_v8, %v286_v62  ;;  %v312_v15 = vmul.f32 %v510_v61, %v311_v11  ;;  %vm324_vm8 = vweird.f32 %v512_v8 }
 0x1cf   :  { %v470_v13 = vpack.c.bf16 %v328_v10, %v327_v9  ;;  %vm325_vm11 = vmor %vm323_vm10, %vm324_vm8 }
 0x1d0   :  { %v319_v14 = vmul.f32 %v512_v8, %v318_v12  ;;  %v316_v18 = vsel %vm315_vm9, %v510_v61, %v312_v15 }
 0x1d1   :  { %471 = vst [vmem:[#allocation9] sm:$0xff] %v470_v13   ;;  %v329_v21 = vmul.f32 %v316_v18, %v714_v41 }
 0x1d2   :  { %v320_v16 = vmul.f32 0.5, %v319_v14 }
 0x1d4   :  { %v321_v17 = vsub.f32 1.5, %v320_v16 }
 0x1d6   :  { %v322_v19 = vmul.f32 %v512_v8, %v321_v17 }
 0x1d8   :  { %v326_v20 = vsel %vm325_vm11, %v512_v8, %v322_v19 }
 0x1d9   :  { %v330_v22 = vmul.f32 %v326_v20, %v719_v44 }
 0x1db   :  { %v475_v23 = vpack.c.bf16 %v330_v22, %v329_v21 }
 0x1dd   :  { %477 = vst [vmem:[#allocation9 + $0x8] sm:$0xff] %v475_v23  }
 0x1de   :  { %364 = dma.vmem_to_hbm [thread:$0]  %s357_s20, 256, %s359_s23, [#allocation10], %s642_s29, %s642_s29, %s643_s30  }
 0x1df   :  { %637 = dma.done.wait [#allocation4], 512  }
 0x1e0   :  { %638 = vsyncadd [#allocation4], 4294966784 }
 0x1e1   :  { %639 = dma.done.wait [#allocation10], 256  }
 0x1e2   :  { %640 = vsyncadd [#allocation10], 4294967040 }
 0x1e3   :  { %373 = vsyncpa [#allocation3], 1 }
 0x1e4   :  { %374 = vsyncpa [#allocation6], 1 }
 0x1e5   :  { %375 = vsyncpa [#allocation4], 1 }
 0x1e6   :  { %376 = vsyncpa [#allocation10], 1 }

</bundles_post_ra>
